<compile_context>
chip_gen: v7x
topology: tpu7x:2x2x1
jax: 0.10.0
libtpu: 0.0.40
codegen_flags: <defaults>
</compile_context>

<pallas_src>
import functools

import jax
import jax.numpy as jnp
from jax.experimental import pallas as pl
from jax.experimental.pallas import tpu as pltpu

_LANE = 128


def _round_up(x, m):
    return ((x + m - 1) // m) * m


def _vmem_limit_bytes():
    """75% of physical VMEM (96 MiB v5e/v6e, 48 MiB v7x); safe fallback 48 MiB."""
    try:
        cap = int(pltpu.get_tpu_info().vmem_capacity_bytes)
        return max(16 * 1024 * 1024, (cap * 3) // 4)
    except Exception:
        return 48 * 1024 * 1024


def _pick_n_blk(n, c_in, c_out, sub):
    """Images packed per block so in/out sublane dims are multiples of `sub`."""
    for nb in range(1, n + 1):
        if n % nb == 0 and (nb * c_in) % sub == 0 and (nb * c_out) % sub == 0:
            return nb
    # Fallback: whole batch in one block (block rows == full array dim, always legal).
    return n


def _pick_tile_hw(hw_lanes, rows_in_p, rows_out_p, dtype_bytes, budget_bytes,
                  n_batch_blocks):
    """Lane tile (multiple of 128) targeting ~2 MiB of streaming input per block."""
    target_x_bytes = 2 * 1024 * 1024                       # amortize ~0.35us/step
    per_col_stream = 2 * (rows_in_p + rows_out_p) * dtype_bytes   # x+out, double-buffered
    max_cols_budget = max(_LANE, budget_bytes // max(per_col_stream, 1))
    target_cols = max(_LANE, target_x_bytes // max(rows_in_p * dtype_bytes, 1))
    tile = min(target_cols, max_cols_budget, 32768, hw_lanes)
    tile = max(_LANE, (tile // _LANE) * _LANE)

    # v7x balance: keep >= ~8 grid steps when possible so both TensorCores get work,
    # but never shrink the per-step x block below ~512 KiB (DMA must beat overhead).
    min_cols = max(_LANE,
                   (((512 * 1024) // max(rows_in_p * dtype_bytes, 1)) // _LANE) * _LANE)

    def steps(t):
        return n_batch_blocks * ((hw_lanes + t - 1) // t)

    while steps(tile) < 8:
        smaller = max(_LANE, ((tile // 2) // _LANE) * _LANE)
        if smaller >= tile or smaller < min_cols:
            break
        tile = smaller
    return tile


def _conv1x1_relu_kernel(x_ref, w_ref, b_ref, o_ref, *, use_bf16_mxu):
    # x_ref: (R_in, T)   w_ref: (R_out, R_in)   b_ref: (R_out, 1)   o_ref: (R_out, T)
    r_out, r_in = w_ref.shape
    t = x_ref.shape[-1]
    x = x_ref[...]
    w = w_ref[...]
    b = b_ref[...].astype(jnp.float32)

    if r_in <= 16:
        # Small contraction (block-diag packed channels): a handful of VPU broadcast
        # FMAs on a full-sublane, lane-dense block.  An MXU matmul with K<=16 would
        # use <7% of the contraction dimension.
        xf = x.astype(jnp.float32)
        wf = w.astype(jnp.float32)
        y = jnp.broadcast_to(b, (r_out, t))
        for k in range(r_in):                 # static, tiny trip-count
            y = y + wf[:, k:k + 1] * xf[k:k + 1, :]
    else:
        # Large contraction: MXU matmul with f32 accumulation.  bf16 operands
        # (opt-in, slight numerics change) lift MXU throughput on v6e/v7x.
        if use_bf16_mxu:
            y = jnp.dot(w.astype(jnp.bfloat16), x.astype(jnp.bfloat16),
                        preferred_element_type=jnp.float32) + b
        else:
            y = jnp.dot(w.astype(jnp.float32), x.astype(jnp.float32),
                        preferred_element_type=jnp.float32) + b

    o_ref[...] = jnp.maximum(y, 0.0).astype(o_ref.dtype)


@functools.partial(jax.jit, static_argnames=("use_bf16_mxu",))
def conv_forward(x_nchw, weight, bias, *, use_bf16_mxu=False):
    """Forward pass of the `Conv` module (eval mode).

    x_nchw : (N, C, H, W)
    weight : (C_out, C_in)  -- PyTorch conv weight squeezed of the 1x1 dims
    bias   : (C_out,)
    """
    N, C, H, W = x_nchw.shape
    C_out, C_in = weight.shape
    assert C_in == C

    dtype = x_nchw.dtype
    dtype_bytes = jnp.dtype(dtype).itemsize
    sub = max(8, 32 // dtype_bytes)           # sublane tile: 8 f32, 16 bf16, 32 int8

    HW = H * W
    hw_lanes = _round_up(HW, _LANE)           # pad only to a lane multiple

    # Sublane packing: n_blk images per block so each vreg's sublanes are fully used.
    n_blk = _pick_n_blk(N, C_in, C_out, sub)
    rows_in, rows_out = n_blk * C_in, n_blk * C_out
    n_batch_blocks = N // n_blk
    rows_in_p = _round_up(rows_in, sub)
    rows_out_p = _round_up(rows_out, sub)

    # (N, C, H, W) -> (N*C, H*W): pure dimension merges, no data movement.
    x_flat = x_nchw.reshape(N * C_in, HW)
    if hw_lanes != HW:
        x_flat = jnp.pad(x_flat, ((0, 0), (0, hw_lanes - HW)))

    # Block-diagonal weight / tiled bias so one block carries n_blk images' channels.
    if n_blk == 1:
        w_big = weight
        b_big = bias.reshape(C_out, 1)
    else:
        w_big = jnp.kron(jnp.eye(n_blk, dtype=weight.dtype), weight)
        b_big = jnp.tile(bias, n_blk).reshape(rows_out, 1)

    vmem_limit = _vmem_limit_bytes()
    w_bytes = rows_out * rows_in * dtype_bytes
    b_bytes = rows_out * dtype_bytes
    # Resident weight/bias: single-buffer them once big enough to matter.
    single_buffer_consts = w_bytes >= (1 << 20)
    const_buffers = 1 if single_buffer_consts else 2
    budget = min(32 * 1024 * 1024, vmem_limit // 2) - const_buffers * (w_bytes + b_bytes)
    budget = max(budget, 4 * 1024 * 1024)

    tile_hw = _pick_tile_hw(hw_lanes, rows_in_p, rows_out_p, dtype_bytes, budget,
                            n_batch_blocks)
    num_hw_tiles = pl.cdiv(hw_lanes, tile_hw)   # ragged last tile handled by clipping

    if single_buffer_consts:
        w_spec = pl.BlockSpec((rows_out, rows_in), lambda i, j: (0, 0),
                              pipeline_mode=pl.Buffered(1))
        b_spec = pl.BlockSpec((rows_out, 1), lambda i, j: (0, 0),
                              pipeline_mode=pl.Buffered(1))
    else:
        w_spec = pl.BlockSpec((rows_out, rows_in), lambda i, j: (0, 0))
        b_spec = pl.BlockSpec((rows_out, 1), lambda i, j: (0, 0))

    flops = 2 * N * hw_lanes * C_in * C_out
    bytes_accessed = dtype_bytes * (N * C_in * hw_lanes + N * C_out * hw_lanes
                                    + rows_out * rows_in + rows_out)

    out_flat = pl.pallas_call(
        functools.partial(_conv1x1_relu_kernel, use_bf16_mxu=use_bf16_mxu),
        out_shape=jax.ShapeDtypeStruct((N * C_out, hw_lanes), dtype),
        grid_spec=pltpu.PrefetchScalarGridSpec(
            num_scalar_prefetch=0,
            grid=(n_batch_blocks, num_hw_tiles),
            in_specs=[
                # Streaming input: lane-dense (rows_in, tile_hw) blocks.
                pl.BlockSpec((rows_in, tile_hw), lambda i, j: (i, j)),
                # Weight / bias: constant index map -> resident across the grid.
                w_spec,
                b_spec,
            ],
            out_specs=pl.BlockSpec((rows_out, tile_hw), lambda i, j: (i, j)),
        ),
        compiler_params=pltpu.CompilerParams(
            dimension_semantics=("parallel", "parallel"),
            vmem_limit_bytes=vmem_limit,
        ),
        cost_estimate=pl.CostEstimate(
            flops=flops, transcendentals=0, bytes_accessed=bytes_accessed),
    )(x_flat, w_big, b_big)

    if hw_lanes != HW:                          # no-op (no extra copy) when aligned
        out_flat = out_flat[:, :HW]
    return out_flat.reshape(N, C_out, H, W)


def init_params(key, features):
    """Deterministic init matching nn.Conv2d(features, features, (1,1)) shapes."""
    kw, kb = jax.random.split(key)
    fan_in = features                          # 1x1 kernel -> fan_in = in_channels
    bound = 1.0 / (fan_in ** 0.5)
    weight = jax.random.uniform(kw, (features, features), jnp.float32,
                                minval=-bound, maxval=bound)
    bias = jax.random.uniform(kb, (features,), jnp.float32,
                              minval=-bound, maxval=bound)
    return weight, bias


if __name__ == "__main__":
    key = jax.random.PRNGKey(0)
    k_x, k_p = jax.random.split(key)

    N, C, H, W = 2, 4, 16, 16                  # features = 4
    x = jax.random.normal(k_x, (N, C, H, W), dtype=jnp.float32)
    weight, bias = init_params(k_p, C)

    out = conv_forward(x, weight, bias)
    jax.block_until_ready(out)

    # Reference check against plain JAX (1x1 conv == channel matmul) + ReLU.
    ref = jnp.einsum("nchw,oc->nohw", x, weight) + bias[None, :, None, None]
    ref = jnp.maximum(ref, 0.0)
    assert out.shape == (N, C, H, W)
    assert jnp.allclose(out, ref, atol=1e-5, rtol=1e-5)

    print("KERNEL_OK")
</pallas_src>

<mosaic_0001>
module attributes {stable_mosaic.version = 11 : i64} {
  func.func @_conv1x1_relu_kernel(%arg0: i32, %arg1: i32, %arg2: memref<8x256xf32, #tpu.memory_space<vmem>>, %arg3: memref<8x8xf32, #tpu.memory_space<vmem>>, %arg4: memref<8x1xf32, #tpu.memory_space<vmem>>, %arg5: memref<8x256xf32, #tpu.memory_space<vmem>>) attributes {dimension_semantics = [#tpu.dimension_semantics<parallel>, #tpu.dimension_semantics<parallel>], iteration_bounds = array<i64: 1, 1>, scalar_prefetch = 0 : i64, scratch_operands = 0 : i64, tpu.core_type = #tpu.core_type<tc>, window_params = [{transform_indices = @transform_0, window_bounds = array<i64: 8, 256>}, {pipeline_mode = #tpu.pipeline_mode<synchronous>, transform_indices = @transform_1, window_bounds = array<i64: 8, 8>}, {pipeline_mode = #tpu.pipeline_mode<synchronous>, transform_indices = @transform_2, window_bounds = array<i64: 8, 1>}, {transform_indices = @transform_3, window_bounds = array<i64: 8, 256>}]} {
    %c0 = arith.constant 0 : index
    %c0_0 = arith.constant 0 : index
    %0 = vector.load %arg2[%c0, %c0_0] : memref<8x256xf32, #tpu.memory_space<vmem>>, vector<8x256xf32>
    %c0_1 = arith.constant 0 : index
    %c0_2 = arith.constant 0 : index
    %1 = vector.load %arg3[%c0_1, %c0_2] : memref<8x8xf32, #tpu.memory_space<vmem>>, vector<8x8xf32>
    %c0_3 = arith.constant 0 : index
    %c0_4 = arith.constant 0 : index
    %2 = vector.load %arg4[%c0_3, %c0_4] : memref<8x1xf32, #tpu.memory_space<vmem>>, vector<8x1xf32>
    %3 = vector.shape_cast %2 : vector<8x1xf32> to vector<8x1xf32>
    %4 = vector.broadcast %3 : vector<8x1xf32> to vector<8x256xf32>
    %5 = vector.extract_strided_slice %1 {offsets = [0, 0], sizes = [8, 1], strides = [1, 1]} : vector<8x8xf32> to vector<8x1xf32>
    %6 = vector.extract_strided_slice %0 {offsets = [0, 0], sizes = [1, 256], strides = [1, 1]} : vector<8x256xf32> to vector<1x256xf32>
    %7 = vector.broadcast %5 : vector<8x1xf32> to vector<8x256xf32>
    %8 = vector.broadcast %6 : vector<1x256xf32> to vector<8x256xf32>
    %9 = arith.mulf %7, %8 : vector<8x256xf32>
    %10 = arith.addf %4, %9 : vector<8x256xf32>
    %11 = vector.extract_strided_slice %1 {offsets = [0, 1], sizes = [8, 1], strides = [1, 1]} : vector<8x8xf32> to vector<8x1xf32>
    %12 = vector.extract_strided_slice %0 {offsets = [1, 0], sizes = [1, 256], strides = [1, 1]} : vector<8x256xf32> to vector<1x256xf32>
    %13 = vector.broadcast %11 : vector<8x1xf32> to vector<8x256xf32>
    %14 = vector.broadcast %12 : vector<1x256xf32> to vector<8x256xf32>
    %15 = arith.mulf %13, %14 : vector<8x256xf32>
    %16 = arith.addf %10, %15 : vector<8x256xf32>
    %17 = vector.extract_strided_slice %1 {offsets = [0, 2], sizes = [8, 1], strides = [1, 1]} : vector<8x8xf32> to vector<8x1xf32>
    %18 = vector.extract_strided_slice %0 {offsets = [2, 0], sizes = [1, 256], strides = [1, 1]} : vector<8x256xf32> to vector<1x256xf32>
    %19 = vector.broadcast %17 : vector<8x1xf32> to vector<8x256xf32>
    %20 = vector.broadcast %18 : vector<1x256xf32> to vector<8x256xf32>
    %21 = arith.mulf %19, %20 : vector<8x256xf32>
    %22 = arith.addf %16, %21 : vector<8x256xf32>
    %23 = vector.extract_strided_slice %1 {offsets = [0, 3], sizes = [8, 1], strides = [1, 1]} : vector<8x8xf32> to vector<8x1xf32>
    %24 = vector.extract_strided_slice %0 {offsets = [3, 0], sizes = [1, 256], strides = [1, 1]} : vector<8x256xf32> to vector<1x256xf32>
    %25 = vector.broadcast %23 : vector<8x1xf32> to vector<8x256xf32>
    %26 = vector.broadcast %24 : vector<1x256xf32> to vector<8x256xf32>
    %27 = arith.mulf %25, %26 : vector<8x256xf32>
    %28 = arith.addf %22, %27 : vector<8x256xf32>
    %29 = vector.extract_strided_slice %1 {offsets = [0, 4], sizes = [8, 1], strides = [1, 1]} : vector<8x8xf32> to vector<8x1xf32>
    %30 = vector.extract_strided_slice %0 {offsets = [4, 0], sizes = [1, 256], strides = [1, 1]} : vector<8x256xf32> to vector<1x256xf32>
    %31 = vector.broadcast %29 : vector<8x1xf32> to vector<8x256xf32>
    %32 = vector.broadcast %30 : vector<1x256xf32> to vector<8x256xf32>
    %33 = arith.mulf %31, %32 : vector<8x256xf32>
    %34 = arith.addf %28, %33 : vector<8x256xf32>
    %35 = vector.extract_strided_slice %1 {offsets = [0, 5], sizes = [8, 1], strides = [1, 1]} : vector<8x8xf32> to vector<8x1xf32>
    %36 = vector.extract_strided_slice %0 {offsets = [5, 0], sizes = [1, 256], strides = [1, 1]} : vector<8x256xf32> to vector<1x256xf32>
    %37 = vector.broadcast %35 : vector<8x1xf32> to vector<8x256xf32>
    %38 = vector.broadcast %36 : vector<1x256xf32> to vector<8x256xf32>
    %39 = arith.mulf %37, %38 : vector<8x256xf32>
    %40 = arith.addf %34, %39 : vector<8x256xf32>
    %41 = vector.extract_strided_slice %1 {offsets = [0, 6], sizes = [8, 1], strides = [1, 1]} : vector<8x8xf32> to vector<8x1xf32>
    %42 = vector.extract_strided_slice %0 {offsets = [6, 0], sizes = [1, 256], strides = [1, 1]} : vector<8x256xf32> to vector<1x256xf32>
    %43 = vector.broadcast %41 : vector<8x1xf32> to vector<8x256xf32>
    %44 = vector.broadcast %42 : vector<1x256xf32> to vector<8x256xf32>
    %45 = arith.mulf %43, %44 : vector<8x256xf32>
    %46 = arith.addf %40, %45 : vector<8x256xf32>
    %47 = vector.extract_strided_slice %1 {offsets = [0, 7], sizes = [8, 1], strides = [1, 1]} : vector<8x8xf32> to vector<8x1xf32>
    %48 = vector.extract_strided_slice %0 {offsets = [7, 0], sizes = [1, 256], strides = [1, 1]} : vector<8x256xf32> to vector<1x256xf32>
    %49 = vector.broadcast %47 : vector<8x1xf32> to vector<8x256xf32>
    %50 = vector.broadcast %48 : vector<1x256xf32> to vector<8x256xf32>
    %51 = arith.mulf %49, %50 : vector<8x256xf32>
    %52 = arith.addf %46, %51 : vector<8x256xf32>
    %cst = arith.constant 0.000000e+00 : f32
    %53 = vector.broadcast %cst : f32 to vector<8x256xf32>
    %54 = arith.maximumf %52, %53 : vector<8x256xf32>
    %c0_5 = arith.constant 0 : index
    %c0_6 = arith.constant 0 : index
    %55 = vector.load %arg5[%c0_5, %c0_6] : memref<8x256xf32, #tpu.memory_space<vmem>>, vector<8x256xf32>
    tpu.vector_store %arg5[%c0_5, %c0_6], %54 {strides = array<i32>} : memref<8x256xf32, #tpu.memory_space<vmem>>, vector<8x256xf32>,
    return
  }
  func.func @transform_0(%arg0: i32, %arg1: i32) -> (i32, i32) {
    %c0_i32 = arith.constant 0 : i32
    return %arg0, %arg1 : i32, i32
  }
  func.func @transform_1(%arg0: i32, %arg1: i32) -> (i32, i32) {
    %c0_i32 = arith.constant 0 : i32
    %c0_i32_0 = arith.constant 0 : i32
    %c0_i32_1 = arith.constant 0 : i32
    return %c0_i32, %c0_i32_0 : i32, i32
  }
  func.func @transform_2(%arg0: i32, %arg1: i32) -> (i32, i32) {
    %c0_i32 = arith.constant 0 : i32
    %c0_i32_0 = arith.constant 0 : i32
    %c0_i32_1 = arith.constant 0 : i32
    return %c0_i32, %c0_i32_0 : i32, i32
  }
  func.func @transform_3(%arg0: i32, %arg1: i32) -> (i32, i32) {
    %c0_i32 = arith.constant 0 : i32
    return %arg0, %arg1 : i32, i32
  }
}

</mosaic_0001>

<bundles_post_ra>
// kernel: tile.8
= control target key start
LH: loop header
LB: loop body
LE: loop exit
PB: predicated region body
PF: predicated region fallthrough
CT: control target
= control target key end

     0   :  { %s22_s0 = inlined_call_operand.vmem [shape: f32[4], index: 0, kind: input, shape index: {}]   ;;  %s23_s1 = inlined_call_operand.vmem [shape: f32[2,4], index: 1, kind: output, shape index: {}]  }
   0x1   :  { %v4_v0 = vld [vmem:[%s22_s0] ss:$0 sm:$0xff] }
   0x2   :  { %5 = vst [vmem:[%s23_s1] sm:$0x3] %v4_v0 }

// kernel: tile.0
= control target key start
LH: loop header
LB: loop body
LE: loop exit
PB: predicated region body
PF: predicated region fallthrough
CT: control target
= control target key end

     0   :  { %s34_s8 = smov 125   ;;  %vm7_vm0 = vcmask 7168   ;;  %s35_s11 = smov 126   ;;  %s61_s0 = inlined_call_operand.vmem [shape: f32[2,4], index: 0, kind: input, shape index: {}]   ;;  %s62_s1 = inlined_call_operand.vmem [shape: f32[8,1], index: 1, kind: output, shape index: {}]  }
   0x1   :  { %v4_v0 = vld [vmem:[%s61_s0] sm:$0x3]  ;;  %s33_s0 = smov 127  }
   0x2   :  { %5 = vst [vmem:[#allocation0] sm:$0x3] %v4_v0 }
   0x9   :  { %v9_v1 = vld [vmem:[#allocation0] sm:$0x3]  }
   0xa   :  { %v21_v2 = vld [vmem:[#allocation0] sm:$0x3]   ;;  %10 = vrot.lane.b32.xlu0 %v9_v1, %s33_s0 }
   0xb   :  { %22 = vrot.lane.b32.xlu1 %v21_v2, %s34_s8  ;;  %v6_v3 = vld [vmem:[#allocation0] sm:$0x3]  }
   0xc   :  { %v15_v4 = vld [vmem:[#allocation0] sm:$0x3]   ;;  %8 = vst.msk [vmem:[%s62_s1] ss:$4 sm:$0x3] %vm7_vm0, %v6_v3  }
   0xe   :  { %16 = vrot.lane.b32.xlu0 %v15_v4, %s35_s11 }
  0x7c   :  { %v11_v5 = vpop.permute.xlu0 %10  }
  0x7d   :  { %v23_v6 = vpop.permute.xlu1 %22   ;;  %27 = vst.msk [vmem:[%s62_s1 + $0x1] ss:$4 sm:$0x3] %vm7_vm0, %v11_v5  }
  0x7e   :  { %29 = vst.msk [vmem:[%s62_s1 + $0x3] ss:$4 sm:$0x3] %vm7_vm0, %v23_v6  }
  0x80   :  { %v17_v7 = vpop.permute.xlu0 %16  }
  0x81   :  { %28 = vst.msk [vmem:[%s62_s1 + $0x2] ss:$4 sm:$0x3] %vm7_vm0, %v17_v7  }

// kernel: conv_forward.1
= control target key start
LH: loop header
LB: loop body
LE: loop exit
PB: predicated region body
PF: predicated region fallthrough
CT: control target
= control target key end

     0   :  { %v177_v0 = vmov 1   ;;  %v178_v1 = vmov 0   ;;  %v179_v4 = vmov 2   ;;  %v180_v5 = vmov 3   ;;  %s223_s1 = inlined_call_operand.vmem [shape: f32[8,8], index: 1, kind: input, shape index: {}]   ;;  %s224_s2 = inlined_call_operand.vmem [shape: f32[8,1], index: 2, kind: input, shape index: {}]   ;;  %s225_s0 = inlined_call_operand.vmem [shape: f32[8,256], index: 0, kind: input, shape index: {}]   ;;  %s226_s3 = inlined_call_operand.vmem [shape: f32[8,256], index: 3, kind: output, shape index: {}]  }
   0x1   :  { %169 = vset.pattern.permute.xlu1 %v177_v0  ;;  %168 = vset.pattern.permute.xlu0 %v178_v1  ;;  %v16_v2 = vld [vmem:[%s223_s1] sm:$0xff]  ;;  %v181_v6 = vmov 4   ;;  %v182_v7 = vmov 6   ;;  %v183_v8 = vmov 5   ;;  %v184_v9 = vmov 7   ;;  %v15_v14 = vld [vmem:[%s225_s0 + $0x8] sm:$0xff] }
   0x2   :  { %41 = vperm.xlu1 %169, %v16_v2   ;;  %25 = vperm.xlu0 %168, %v16_v2   ;;  %v17_v3 = vld [vmem:[%s224_s2] sm:$0xff]  ;;  %v28_v10 = vlaneseq }
   0x3   :  { %v14_v13 = vld [vmem:[%s225_s0] sm:$0xff] }
   0x4   :  { %v29_v11 = vshrl.u32 %v28_v10, 7 }
   0x6   :  { %170 = vset.pattern.permute.xlu1 %v179_v4  ;;  %20 = vperm.xlu0 %168, %v17_v3   ;;  %v30_v12 = vsub.s32 0, %v29_v11  ;;  %v46_v15 = vsub.s32 1, %v29_v11  ;;  %v62_v18 = vsub.s32 2, %v29_v11  ;;  %v78_v21 = vsub.s32 3, %v29_v11 }
   0x7   :  { %57 = vperm.xlu1 %170, %v16_v2   ;;  %v94_v28 = vsub.s32 4, %v29_v11  ;;  %v110_v43 = vsub.s32 5, %v29_v11  ;;  %v126_v44 = vsub.s32 6, %v29_v11  ;;  %v142_v59 = vsub.s32 7, %v29_v11 }
   0x8   :  { %v31_v16 = vrot.slane %v14_v13, %v30_v12  ;;  %v35_v17 = vrot.slane %v15_v14, %v30_v12  ;;  %v47_v22 = vrot.slane %v14_v13, %v46_v15  ;;  %v51_v23 = vrot.slane %v15_v14, %v46_v15 }
   0x9   :  { %v63_v26 = vrot.slane %v14_v13, %v62_v18  ;;  %v67_v27 = vrot.slane %v15_v14, %v62_v18  ;;  %v79_v30 = vrot.slane %v14_v13, %v78_v21  ;;  %v83_v38 = vrot.slane %v15_v14, %v78_v21 }
   0xa   :  { %171 = vset.pattern.permute.xlu0 %v180_v5  ;;  %v95_v39 = vrot.slane %v14_v13, %v94_v28  ;;  %v99_v42 = vrot.slane %v15_v14, %v94_v28  ;;  %v111_v53 = vrot.slane %v14_v13, %v110_v43  ;;  %v115_v54 = vrot.slane %v15_v14, %v110_v43 }
   0xb   :  { %172 = vset.pattern.permute.xlu1 %v181_v6  ;;  %73 = vperm.xlu0 %171, %v16_v2   ;;  %v127_v57 = vrot.slane %v14_v13, %v126_v44  ;;  %v131_v58 = vrot.slane %v15_v14, %v126_v44  ;;  %v143_v4 = vrot.slane %v14_v13, %v142_v59 }
   0xc   :  { %89 = vperm.xlu1 %172, %v16_v2   ;;  %v147_v5 = vrot.slane %v15_v14, %v142_v59 }
   0xf   :  { %174 = vset.pattern.permute.xlu0 %v182_v7 }
  0x10   :  { %173 = vset.pattern.permute.xlu1 %v183_v8  ;;  %121 = vperm.xlu0 %174, %v16_v2  }
  0x11   :  { %105 = vperm.xlu1 %173, %v16_v2  }
  0x14   :  { %176 = vset.pattern.permute.xlu0 %v184_v9 }
  0x15   :  { %175 = vset.pattern.permute.xlu1 %v184_v9 }
  0x16   :  { %137 = vperm.xlu1 %175, %v16_v2  }
  0x81   :  { %v42_v19 = vpop.permute.xlu1 %41  ;;  %v26_v20 = vpop.permute.xlu0 %25 }
  0x82   :  { %v36_v24 = vmul.f32 %v31_v16, %v26_v20  ;;  %v37_v25 = vmul.f32 %v35_v17, %v26_v20  ;;  %v52_v31 = vmul.f32 %v47_v22, %v42_v19  ;;  %v53_v32 = vmul.f32 %v51_v23, %v42_v19 }
  0x85   :  { %v21_v29 = vpop.permute.xlu0 %20 }
  0x86   :  { %v38_v33 = vadd.f32 %v36_v24, %v21_v29  ;;  %v39_v34 = vadd.f32 %v37_v25, %v21_v29  ;;  %v58_v35 = vpop.permute.xlu1 %57 }
  0x87   :  { %v68_v36 = vmul.f32 %v63_v26, %v58_v35  ;;  %v69_v37 = vmul.f32 %v67_v27, %v58_v35 }
  0x88   :  { %v54_v40 = vadd.f32 %v52_v31, %v38_v33  ;;  %v55_v41 = vadd.f32 %v53_v32, %v39_v34 }
  0x8a   :  { %v70_v45 = vadd.f32 %v68_v36, %v54_v40  ;;  %v71_v46 = vadd.f32 %v69_v37, %v55_v41  ;;  %v74_v47 = vpop.permute.xlu0 %73 }
  0x8b   :  { %v84_v48 = vmul.f32 %v79_v30, %v74_v47  ;;  %v85_v49 = vmul.f32 %v83_v38, %v74_v47  ;;  %v90_v50 = vpop.permute.xlu1 %89 }
  0x8c   :  { %v100_v51 = vmul.f32 %v95_v39, %v90_v50  ;;  %v101_v52 = vmul.f32 %v99_v42, %v90_v50 }
  0x8d   :  { %v86_v55 = vadd.f32 %v84_v48, %v70_v45  ;;  %v87_v56 = vadd.f32 %v85_v49, %v71_v46 }
  0x8f   :  { %v122_v60 = vpop.permute.xlu0 %121  ;;  %v102_v61 = vadd.f32 %v100_v51, %v86_v55  ;;  %v103_v62 = vadd.f32 %v101_v52, %v87_v56 }
  0x90   :  { %v106_v63 = vpop.permute.xlu1 %105  ;;  %v132_v2 = vmul.f32 %v127_v57, %v122_v60  ;;  %v133_v3 = vmul.f32 %v131_v58, %v122_v60 }
  0x91   :  { %v116_v0 = vmul.f32 %v111_v53, %v106_v63  ;;  %v117_v1 = vmul.f32 %v115_v54, %v106_v63 }
  0x93   :  { %v118_v6 = vadd.f32 %v116_v0, %v102_v61  ;;  %v119_v7 = vadd.f32 %v117_v1, %v103_v62 }
  0x95   :  { %v134_v8 = vadd.f32 %v132_v2, %v118_v6  ;;  %v135_v9 = vadd.f32 %v133_v3, %v119_v7  ;;  %v138_v10 = vpop.permute.xlu1 %137 }
  0x96   :  { %v148_v12 = vmul.f32 %v143_v4, %v138_v10  ;;  %v149_v15 = vmul.f32 %v147_v5, %v138_v10 }
  0x98   :  { %v150_v16 = vadd.f32 %v148_v12, %v134_v8  ;;  %v151_v17 = vadd.f32 %v149_v15, %v135_v9 }
  0x9a   :  { %v152_v11 = vmax.f32 %v150_v16, 0.0  ;;  %v153_v18 = vmax.f32 %v151_v17, 0.0 }
  0x9c   :  { %154 = vst [vmem:[%s226_s3] sm:$0xff] %v152_v11  ;;  %155 = vst [vmem:[%s226_s3 + $0x8] sm:$0xff] %v153_v18 }

</bundles_post_ra>
